<compile_context>
chip_gen: v5e
topology: v5e:2x2
jax: 0.10.0
libtpu: 0.0.40
codegen_flags: <defaults>
</compile_context>

<pallas_src>
import functools

import jax
import jax.numpy as jnp
from jax.experimental import pallas as pl
from jax.experimental.pallas import tpu as pltpu

# ---- Actor config (deterministic, synthetic) ----------------------------------
STOCHASTIC_SIZE = 16
DETERMINISTIC_SIZE = 32
HIDDEN_SIZE = 32
NUM_LAYERS = 3          # number of hidden (Linear + activation) blocks
ACTION_SIZE = 4         # continuous -> network output is 2 * ACTION_SIZE
MEAN_SCALE = 5.0
INV_MEAN_SCALE = 1.0 / MEAN_SCALE
INIT_STD = 5.0
MIN_STD = 1e-4


def _elu(x):
    # exp of the clamped argument: avoids spurious inf for large positives
    # (still selected away by where, but keeps the EUP output finite).
    return jnp.where(x > 0, x, jnp.exp(jnp.minimum(x, 0.0)) - 1.0)


def _softplus(x):
    # numerically stable softplus
    return jnp.maximum(x, 0.0) + jnp.log1p(jnp.exp(-jnp.abs(x)))


def actor_kernel(post_ref, det_ref,
                 w1p_ref, w1d_ref, b1_ref,
                 w2_ref, b2_ref, w3_ref, b3_ref,
                 wom_ref, bom_ref, wos_ref, bos_ref,
                 eps_ref, act_ref):
    """One batch-tile of the Actor forward (MLP + tanh-Normal rsample).

    All activations are (features, tile_b): batch on the lane axis throughout.
    """
    # First layer, split across the two feature-first inputs:
    # (H, S) @ (S, tile_b) + (H, D) @ (D, tile_b) -> (H, tile_b).
    h = (jnp.dot(w1p_ref[...], post_ref[...], preferred_element_type=jnp.float32)
         + jnp.dot(w1d_ref[...], det_ref[...], preferred_element_type=jnp.float32)
         + b1_ref[...])
    h = _elu(h)

    # Remaining hidden layers: (H, H) @ (H, tile_b) -> (H, tile_b).
    for w_ref, b_ref in ((w2_ref, b2_ref), (w3_ref, b3_ref)):
        h = _elu(jnp.dot(w_ref[...], h, preferred_element_type=jnp.float32)
                 + b_ref[...])

    # Split output head: two tile-aligned (A, tile_b) results starting at
    # sublane 0 — no sublane-offset slice of a (2A, tile_b) block.
    mean_raw = (jnp.dot(wom_ref[...], h, preferred_element_type=jnp.float32)
                + bom_ref[...])
    std_raw = (jnp.dot(wos_ref[...], h, preferred_element_type=jnp.float32)
               + bos_ref[...])

    mean = MEAN_SCALE * jnp.tanh(mean_raw * INV_MEAN_SCALE)   # const mul, not div
    std = _softplus(std_raw + INIT_STD) + MIN_STD
    pre_tanh = mean + std * eps_ref[...]                      # Normal rsample
    act_ref[...] = jnp.tanh(pre_tanh)                         # TanhTransform
    # Store is (A, tile_b): lane-dense along the batch axis.


def init_params(key):
    """Deterministic parameter init (uniform(-1/sqrt(fan_in), +), torch-style).

    Weights are stored (out_features, in_features). The first layer is split
    into a posterior half and a deterministic half; the output head is split
    into mean and std halves. Biases are (out, 1) so they broadcast along the
    lane (batch) axis inside the kernel.
    """
    params = {}
    din = STOCHASTIC_SIZE + DETERMINISTIC_SIZE

    def uni(k, shape, bound):
        return jax.random.uniform(k, shape, jnp.float32, -bound, bound)

    (k1p, k1d, k1b, k2w, k2b, k3w, k3b,
     komw, komb, kosw, kosb) = jax.random.split(key, 11)

    bound1 = 1.0 / jnp.sqrt(din)
    params["w1p"] = uni(k1p, (HIDDEN_SIZE, STOCHASTIC_SIZE), bound1)
    params["w1d"] = uni(k1d, (HIDDEN_SIZE, DETERMINISTIC_SIZE), bound1)
    params["b1"] = uni(k1b, (HIDDEN_SIZE, 1), bound1)

    boundh = 1.0 / jnp.sqrt(HIDDEN_SIZE)
    params["w2"] = uni(k2w, (HIDDEN_SIZE, HIDDEN_SIZE), boundh)
    params["b2"] = uni(k2b, (HIDDEN_SIZE, 1), boundh)
    params["w3"] = uni(k3w, (HIDDEN_SIZE, HIDDEN_SIZE), boundh)
    params["b3"] = uni(k3b, (HIDDEN_SIZE, 1), boundh)

    params["wom"] = uni(komw, (ACTION_SIZE, HIDDEN_SIZE), boundh)
    params["bom"] = uni(komb, (ACTION_SIZE, 1), boundh)
    params["wos"] = uni(kosw, (ACTION_SIZE, HIDDEN_SIZE), boundh)
    params["bos"] = uni(kosb, (ACTION_SIZE, 1), boundh)
    return params


def _round_up(x, m):
    return ((x + m - 1) // m) * m


def _choose_tile_b(b, max_tile=4096):
    """Batch tile: lane-dense, bounded VMEM, >=2 parallel steps when it pays.

    * b <= 128: single whole-array block (always legal, one grid step).
    * b  > 128: tiles are multiples of 128 (batch gets padded), capped at
      max_tile so the double-buffered working set stays well under the 32 MiB
      scoped-VMEM default (and v7x's 64 MiB physical VMEM), and sized to give
      at least 2 grid steps so v7x's two TensorCores share the "parallel"
      batch axis.
    """
    if b <= 128:
        return b
    bp = _round_up(b, 128)
    tile = min(max_tile, max(128, _round_up(bp // 2, 128)))
    return tile


@functools.partial(jax.jit, static_argnames=("tile_b",))
def actor_forward(post_t, det_t, eps_t, params, tile_b=None):
    """post_t (S, B), det_t (D, B), eps_t (A, B) -> action (B, A)."""
    s, b = post_t.shape
    d = det_t.shape[0]
    a = eps_t.shape[0]
    if tile_b is None:
        tile_b = _choose_tile_b(b)

    # Pad the batch (lane) axis to a multiple of the tile.
    pad = (-b) % tile_b
    if pad:
        post_t = jnp.pad(post_t, ((0, 0), (0, pad)))
        det_t = jnp.pad(det_t, ((0, 0), (0, pad)))
        eps_t = jnp.pad(eps_t, ((0, 0), (0, pad)))
    bp = b + pad

    h = HIDDEN_SIZE
    grid = (bp // tile_b,)

    def full(shape):
        # whole-array block, replicated across the batch grid
        return pl.BlockSpec(shape, lambda i: (0, 0))

    def lanes(rows):
        # (rows, tile_b) block marching along the lane (batch) axis
        return pl.BlockSpec((rows, tile_b), lambda i: (0, i))

    flops = 2 * bp * (h * (s + d) + (NUM_LAYERS - 1) * h * h + 2 * a * h)
    transcendentals = bp * (NUM_LAYERS * h + 4 * a)   # ELU exps + tanh/softplus
    bytes_accessed = 4 * (bp * (s + d + 2 * a)
                          + h * (s + d) + (NUM_LAYERS - 1) * h * h
                          + 2 * a * h + NUM_LAYERS * h + 2 * a)

    act_t = pl.pallas_call(
        actor_kernel,
        out_shape=jax.ShapeDtypeStruct((a, bp), jnp.float32),
        grid=grid,
        in_specs=[
            lanes(s),                                      # posterior (S, B)
            lanes(d),                                      # deterministic (D, B)
            full((h, s)), full((h, d)), full((h, 1)),      # layer 1 (split)
            full((h, h)), full((h, 1)),                    # layer 2
            full((h, h)), full((h, 1)),                    # layer 3
            full((a, h)), full((a, 1)),                    # output head: mean
            full((a, h)), full((a, 1)),                    # output head: std
            lanes(a),                                      # eps (A, B)
        ],
        out_specs=lanes(a),
        compiler_params=pltpu.CompilerParams(dimension_semantics=("parallel",)),
        cost_estimate=pl.CostEstimate(flops=flops,
                                      transcendentals=transcendentals,
                                      bytes_accessed=bytes_accessed),
    )(post_t, det_t,
      params["w1p"], params["w1d"], params["b1"],
      params["w2"], params["b2"], params["w3"], params["b3"],
      params["wom"], params["bom"], params["wos"], params["bos"],
      eps_t)

    # Back to the module's (B, A) layout; drop any batch padding.
    # TODO(synk): if the consumer accepts (A, B) directly, skip this transpose.
    return act_t[:, :b].T


def actor_forward_ref(posterior, deterministic, eps, params):
    """Pure-JAX reference (feature-last, like the PyTorch module)."""
    x = jnp.concatenate([posterior, deterministic], axis=-1)
    w1 = jnp.concatenate([params["w1p"], params["w1d"]], axis=1)  # (H, S+D)
    h = _elu(x @ w1.T + params["b1"].T)
    for name in ("2", "3"):
        h = _elu(h @ params["w" + name].T + params["b" + name].T)
    mean_raw = h @ params["wom"].T + params["bom"].T
    std_raw = h @ params["wos"].T + params["bos"].T
    mean = MEAN_SCALE * jnp.tanh(mean_raw / MEAN_SCALE)
    std = _softplus(std_raw + INIT_STD) + MIN_STD
    return jnp.tanh(mean + std * eps)


if __name__ == "__main__":
    key = jax.random.PRNGKey(0)
    k_post, k_det, k_eps, k_params = jax.random.split(key, 4)

    batch = 16
    # Feature-first inputs (S, B)/(D, B)/(A, B): lane-dense for the kernel.
    post_t = jax.random.normal(k_post, (STOCHASTIC_SIZE, batch), jnp.float32)
    det_t = jax.random.normal(k_det, (DETERMINISTIC_SIZE, batch), jnp.float32)
    eps_t = jax.random.normal(k_eps, (ACTION_SIZE, batch), jnp.float32)
    params = init_params(k_params)

    action = actor_forward(post_t, det_t, eps_t, params)
    action = jax.block_until_ready(action)

    ref = actor_forward_ref(post_t.T, det_t.T, eps_t.T, params)
    assert action.shape == (batch, ACTION_SIZE)
    assert jnp.allclose(action, ref, atol=1e-5, rtol=1e-5), "mismatch vs reference"

    print("KERNEL_OK")
</pallas_src>

<mosaic_0001>
module attributes {stable_mosaic.version = 11 : i64} {
  func.func @actor_kernel(%arg0: i32, %arg1: memref<16x16xf32, #tpu.memory_space<vmem>>, %arg2: memref<32x16xf32, #tpu.memory_space<vmem>>, %arg3: memref<32x16xf32, #tpu.memory_space<vmem>>, %arg4: memref<32x32xf32, #tpu.memory_space<vmem>>, %arg5: memref<32x1xf32, #tpu.memory_space<vmem>>, %arg6: memref<32x32xf32, #tpu.memory_space<vmem>>, %arg7: memref<32x1xf32, #tpu.memory_space<vmem>>, %arg8: memref<32x32xf32, #tpu.memory_space<vmem>>, %arg9: memref<32x1xf32, #tpu.memory_space<vmem>>, %arg10: memref<4x32xf32, #tpu.memory_space<vmem>>, %arg11: memref<4x1xf32, #tpu.memory_space<vmem>>, %arg12: memref<4x32xf32, #tpu.memory_space<vmem>>, %arg13: memref<4x1xf32, #tpu.memory_space<vmem>>, %arg14: memref<4x16xf32, #tpu.memory_space<vmem>>, %arg15: memref<4x16xf32, #tpu.memory_space<vmem>>) attributes {dimension_semantics = [#tpu.dimension_semantics<parallel>], iteration_bounds = array<i64: 1>, scalar_prefetch = 0 : i64, scratch_operands = 0 : i64, tpu.core_type = #tpu.core_type<tc>, window_params = [{transform_indices = @transform_0, window_bounds = array<i64: 16, 16>}, {transform_indices = @transform_1, window_bounds = array<i64: 32, 16>}, {pipeline_mode = #tpu.pipeline_mode<synchronous>, transform_indices = @transform_2, window_bounds = array<i64: 32, 16>}, {pipeline_mode = #tpu.pipeline_mode<synchronous>, transform_indices = @transform_3, window_bounds = array<i64: 32, 32>}, {pipeline_mode = #tpu.pipeline_mode<synchronous>, transform_indices = @transform_4, window_bounds = array<i64: 32, 1>}, {pipeline_mode = #tpu.pipeline_mode<synchronous>, transform_indices = @transform_5, window_bounds = array<i64: 32, 32>}, {pipeline_mode = #tpu.pipeline_mode<synchronous>, transform_indices = @transform_6, window_bounds = array<i64: 32, 1>}, {pipeline_mode = #tpu.pipeline_mode<synchronous>, transform_indices = @transform_7, window_bounds = array<i64: 32, 32>}, {pipeline_mode = #tpu.pipeline_mode<synchronous>, transform_indices = @transform_8, window_bounds = array<i64: 32, 1>}, {pipeline_mode = #tpu.pipeline_mode<synchronous>, transform_indices = @transform_9, window_bounds = array<i64: 4, 32>}, {pipeline_mode = #tpu.pipeline_mode<synchronous>, transform_indices = @transform_10, window_bounds = array<i64: 4, 1>}, {pipeline_mode = #tpu.pipeline_mode<synchronous>, transform_indices = @transform_11, window_bounds = array<i64: 4, 32>}, {pipeline_mode = #tpu.pipeline_mode<synchronous>, transform_indices = @transform_12, window_bounds = array<i64: 4, 1>}, {transform_indices = @transform_13, window_bounds = array<i64: 4, 16>}, {transform_indices = @transform_14, window_bounds = array<i64: 4, 16>}]} {
    %c0 = arith.constant 0 : index
    %c0_0 = arith.constant 0 : index
    %0 = vector.load %arg3[%c0, %c0_0] : memref<32x16xf32, #tpu.memory_space<vmem>>, vector<32x16xf32>
    %c0_1 = arith.constant 0 : index
    %c0_2 = arith.constant 0 : index
    %1 = vector.load %arg1[%c0_1, %c0_2] : memref<16x16xf32, #tpu.memory_space<vmem>>, vector<16x16xf32>
    %cst = arith.constant dense<0.000000e+00> : vector<32x16xf32>
    %2 = tpu.matmul %0, %1, %cst {dimension_numbers = #tpu.dot_dimension_numbers<[1], [0], [0], [1], [0, 0, 1, 1], [], []>} : vector<32x16xf32>, vector<16x16xf32>, vector<32x16xf32> -> vector<32x16xf32>
    %c0_3 = arith.constant 0 : index
    %c0_4 = arith.constant 0 : index
    %3 = vector.load %arg4[%c0_3, %c0_4] : memref<32x32xf32, #tpu.memory_space<vmem>>, vector<32x32xf32>
    %c0_5 = arith.constant 0 : index
    %c0_6 = arith.constant 0 : index
    %4 = vector.load %arg2[%c0_5, %c0_6] : memref<32x16xf32, #tpu.memory_space<vmem>>, vector<32x16xf32>
    %cst_7 = arith.constant dense<0.000000e+00> : vector<32x16xf32>
    %5 = tpu.matmul %3, %4, %cst_7 {dimension_numbers = #tpu.dot_dimension_numbers<[1], [0], [0], [1], [0, 0, 1, 1], [], []>} : vector<32x32xf32>, vector<32x16xf32>, vector<32x16xf32> -> vector<32x16xf32>
    %6 = arith.addf %2, %5 : vector<32x16xf32>
    %c0_8 = arith.constant 0 : index
    %c0_9 = arith.constant 0 : index
    %7 = vector.load %arg5[%c0_8, %c0_9] : memref<32x1xf32, #tpu.memory_space<vmem>>, vector<32x1xf32>
    %8 = vector.broadcast %7 : vector<32x1xf32> to vector<32x16xf32>
    %9 = arith.addf %6, %8 : vector<32x16xf32>
    %cst_10 = arith.constant 0.000000e+00 : f32
    %10 = vector.broadcast %cst_10 : f32 to vector<32x16xf32>
    %11 = arith.cmpf ogt, %9, %10 : vector<32x16xf32>
    %cst_11 = arith.constant 0.000000e+00 : f32
    %12 = vector.broadcast %cst_11 : f32 to vector<32x16xf32>
    %13 = arith.minimumf %9, %12 : vector<32x16xf32>
    %14 = math.exp %13 : vector<32x16xf32>
    %cst_12 = arith.constant 1.000000e+00 : f32
    %15 = vector.broadcast %cst_12 : f32 to vector<32x16xf32>
    %16 = arith.subf %14, %15 : vector<32x16xf32>
    %17 = arith.select %11, %9, %16 : vector<32x16xi1>, vector<32x16xf32>
    %c0_13 = arith.constant 0 : index
    %c0_14 = arith.constant 0 : index
    %18 = vector.load %arg6[%c0_13, %c0_14] : memref<32x32xf32, #tpu.memory_space<vmem>>, vector<32x32xf32>
    %cst_15 = arith.constant dense<0.000000e+00> : vector<32x16xf32>
    %19 = tpu.matmul %18, %17, %cst_15 {dimension_numbers = #tpu.dot_dimension_numbers<[1], [0], [0], [1], [0, 0, 1, 1], [], []>} : vector<32x32xf32>, vector<32x16xf32>, vector<32x16xf32> -> vector<32x16xf32>
    %c0_16 = arith.constant 0 : index
    %c0_17 = arith.constant 0 : index
    %20 = vector.load %arg7[%c0_16, %c0_17] : memref<32x1xf32, #tpu.memory_space<vmem>>, vector<32x1xf32>
    %21 = vector.broadcast %20 : vector<32x1xf32> to vector<32x16xf32>
    %22 = arith.addf %19, %21 : vector<32x16xf32>
    %cst_18 = arith.constant 0.000000e+00 : f32
    %23 = vector.broadcast %cst_18 : f32 to vector<32x16xf32>
    %24 = arith.cmpf ogt, %22, %23 : vector<32x16xf32>
    %cst_19 = arith.constant 0.000000e+00 : f32
    %25 = vector.broadcast %cst_19 : f32 to vector<32x16xf32>
    %26 = arith.minimumf %22, %25 : vector<32x16xf32>
    %27 = math.exp %26 : vector<32x16xf32>
    %cst_20 = arith.constant 1.000000e+00 : f32
    %28 = vector.broadcast %cst_20 : f32 to vector<32x16xf32>
    %29 = arith.subf %27, %28 : vector<32x16xf32>
    %30 = arith.select %24, %22, %29 : vector<32x16xi1>, vector<32x16xf32>
    %c0_21 = arith.constant 0 : index
    %c0_22 = arith.constant 0 : index
    %31 = vector.load %arg8[%c0_21, %c0_22] : memref<32x32xf32, #tpu.memory_space<vmem>>, vector<32x32xf32>
    %cst_23 = arith.constant dense<0.000000e+00> : vector<32x16xf32>
    %32 = tpu.matmul %31, %30, %cst_23 {dimension_numbers = #tpu.dot_dimension_numbers<[1], [0], [0], [1], [0, 0, 1, 1], [], []>} : vector<32x32xf32>, vector<32x16xf32>, vector<32x16xf32> -> vector<32x16xf32>
    %c0_24 = arith.constant 0 : index
    %c0_25 = arith.constant 0 : index
    %33 = vector.load %arg9[%c0_24, %c0_25] : memref<32x1xf32, #tpu.memory_space<vmem>>, vector<32x1xf32>
    %34 = vector.broadcast %33 : vector<32x1xf32> to vector<32x16xf32>
    %35 = arith.addf %32, %34 : vector<32x16xf32>
    %cst_26 = arith.constant 0.000000e+00 : f32
    %36 = vector.broadcast %cst_26 : f32 to vector<32x16xf32>
    %37 = arith.cmpf ogt, %35, %36 : vector<32x16xf32>
    %cst_27 = arith.constant 0.000000e+00 : f32
    %38 = vector.broadcast %cst_27 : f32 to vector<32x16xf32>
    %39 = arith.minimumf %35, %38 : vector<32x16xf32>
    %40 = math.exp %39 : vector<32x16xf32>
    %cst_28 = arith.constant 1.000000e+00 : f32
    %41 = vector.broadcast %cst_28 : f32 to vector<32x16xf32>
    %42 = arith.subf %40, %41 : vector<32x16xf32>
    %43 = arith.select %37, %35, %42 : vector<32x16xi1>, vector<32x16xf32>
    %c0_29 = arith.constant 0 : index
    %c0_30 = arith.constant 0 : index
    %44 = vector.load %arg10[%c0_29, %c0_30] : memref<4x32xf32, #tpu.memory_space<vmem>>, vector<4x32xf32>
    %cst_31 = arith.constant dense<0.000000e+00> : vector<4x16xf32>
    %45 = tpu.matmul %44, %43, %cst_31 {dimension_numbers = #tpu.dot_dimension_numbers<[1], [0], [0], [1], [0, 0, 1, 1], [], []>} : vector<4x32xf32>, vector<32x16xf32>, vector<4x16xf32> -> vector<4x16xf32>
    %c0_32 = arith.constant 0 : index
    %c0_33 = arith.constant 0 : index
    %46 = vector.load %arg11[%c0_32, %c0_33] : memref<4x1xf32, #tpu.memory_space<vmem>>, vector<4x1xf32>
    %47 = vector.broadcast %46 : vector<4x1xf32> to vector<4x16xf32>
    %48 = arith.addf %45, %47 : vector<4x16xf32>
    %c0_34 = arith.constant 0 : index
    %c0_35 = arith.constant 0 : index
    %49 = vector.load %arg12[%c0_34, %c0_35] : memref<4x32xf32, #tpu.memory_space<vmem>>, vector<4x32xf32>
    %cst_36 = arith.constant dense<0.000000e+00> : vector<4x16xf32>
    %50 = tpu.matmul %49, %43, %cst_36 {dimension_numbers = #tpu.dot_dimension_numbers<[1], [0], [0], [1], [0, 0, 1, 1], [], []>} : vector<4x32xf32>, vector<32x16xf32>, vector<4x16xf32> -> vector<4x16xf32>
    %c0_37 = arith.constant 0 : index
    %c0_38 = arith.constant 0 : index
    %51 = vector.load %arg13[%c0_37, %c0_38] : memref<4x1xf32, #tpu.memory_space<vmem>>, vector<4x1xf32>
    %52 = vector.broadcast %51 : vector<4x1xf32> to vector<4x16xf32>
    %53 = arith.addf %50, %52 : vector<4x16xf32>
    %cst_39 = arith.constant 2.000000e-01 : f32
    %54 = vector.broadcast %cst_39 : f32 to vector<4x16xf32>
    %55 = arith.mulf %48, %54 : vector<4x16xf32>
    %56 = math.tanh %55 : vector<4x16xf32>
    %cst_40 = arith.constant 5.000000e+00 : f32
    %57 = vector.broadcast %cst_40 : f32 to vector<4x16xf32>
    %58 = arith.mulf %57, %56 : vector<4x16xf32>
    %cst_41 = arith.constant 5.000000e+00 : f32
    %59 = vector.broadcast %cst_41 : f32 to vector<4x16xf32>
    %60 = arith.addf %53, %59 : vector<4x16xf32>
    %cst_42 = arith.constant 0.000000e+00 : f32
    %61 = vector.broadcast %cst_42 : f32 to vector<4x16xf32>
    %62 = arith.maximumf %60, %61 : vector<4x16xf32>
    %63 = math.absf %60 : vector<4x16xf32>
    %cst_43 = arith.constant 0.000000e+00 : f32
    %64 = vector.broadcast %cst_43 : f32 to vector<4x16xf32>
    %65 = arith.subf %64, %63 : vector<4x16xf32>
    %66 = math.exp %65 : vector<4x16xf32>
    %67 = math.log1p %66 : vector<4x16xf32>
    %68 = arith.addf %62, %67 : vector<4x16xf32>
    %cst_44 = arith.constant 9.99999974E-5 : f32
    %69 = vector.broadcast %cst_44 : f32 to vector<4x16xf32>
    %70 = arith.addf %68, %69 : vector<4x16xf32>
    %c0_45 = arith.constant 0 : index
    %c0_46 = arith.constant 0 : index
    %71 = vector.load %arg14[%c0_45, %c0_46] : memref<4x16xf32, #tpu.memory_space<vmem>>, vector<4x16xf32>
    %72 = arith.mulf %70, %71 : vector<4x16xf32>
    %73 = arith.addf %58, %72 : vector<4x16xf32>
    %74 = math.tanh %73 : vector<4x16xf32>
    %c0_47 = arith.constant 0 : index
    %c0_48 = arith.constant 0 : index
    %75 = vector.load %arg15[%c0_47, %c0_48] : memref<4x16xf32, #tpu.memory_space<vmem>>, vector<4x16xf32>
    tpu.vector_store %arg15[%c0_47, %c0_48], %74 {strides = array<i32>} : memref<4x16xf32, #tpu.memory_space<vmem>>, vector<4x16xf32>,
    return
  }
  func.func @transform_0(%arg0: i32) -> (i32, i32) {
    %c0_i32 = arith.constant 0 : i32
    %c0_i32_0 = arith.constant 0 : i32
    return %c0_i32, %arg0 : i32, i32
  }
  func.func @transform_1(%arg0: i32) -> (i32, i32) {
    %c0_i32 = arith.constant 0 : i32
    %c0_i32_0 = arith.constant 0 : i32
    return %c0_i32, %arg0 : i32, i32
  }
  func.func @transform_2(%arg0: i32) -> (i32, i32) {
    %c0_i32 = arith.constant 0 : i32
    %c0_i32_0 = arith.constant 0 : i32
    %c0_i32_1 = arith.constant 0 : i32
    return %c0_i32, %c0_i32_0 : i32, i32
  }
  func.func @transform_3(%arg0: i32) -> (i32, i32) {
    %c0_i32 = arith.constant 0 : i32
    %c0_i32_0 = arith.constant 0 : i32
    %c0_i32_1 = arith.constant 0 : i32
    return %c0_i32, %c0_i32_0 : i32, i32
  }
  func.func @transform_4(%arg0: i32) -> (i32, i32) {
    %c0_i32 = arith.constant 0 : i32
    %c0_i32_0 = arith.constant 0 : i32
    %c0_i32_1 = arith.constant 0 : i32
    return %c0_i32, %c0_i32_0 : i32, i32
  }
  func.func @transform_5(%arg0: i32) -> (i32, i32) {
    %c0_i32 = arith.constant 0 : i32
    %c0_i32_0 = arith.constant 0 : i32
    %c0_i32_1 = arith.constant 0 : i32
    return %c0_i32, %c0_i32_0 : i32, i32
  }
  func.func @transform_6(%arg0: i32) -> (i32, i32) {
    %c0_i32 = arith.constant 0 : i32
    %c0_i32_0 = arith.constant 0 : i32
    %c0_i32_1 = arith.constant 0 : i32
    return %c0_i32, %c0_i32_0 : i32, i32
  }
  func.func @transform_7(%arg0: i32) -> (i32, i32) {
    %c0_i32 = arith.constant 0 : i32
    %c0_i32_0 = arith.constant 0 : i32
    %c0_i32_1 = arith.constant 0 : i32
    return %c0_i32, %c0_i32_0 : i32, i32
  }
  func.func @transform_8(%arg0: i32) -> (i32, i32) {
    %c0_i32 = arith.constant 0 : i32
    %c0_i32_0 = arith.constant 0 : i32
    %c0_i32_1 = arith.constant 0 : i32
    return %c0_i32, %c0_i32_0 : i32, i32
  }
  func.func @transform_9(%arg0: i32) -> (i32, i32) {
    %c0_i32 = arith.constant 0 : i32
    %c0_i32_0 = arith.constant 0 : i32
    %c0_i32_1 = arith.constant 0 : i32
    return %c0_i32, %c0_i32_0 : i32, i32
  }
  func.func @transform_10(%arg0: i32) -> (i32, i32) {
    %c0_i32 = arith.constant 0 : i32
    %c0_i32_0 = arith.constant 0 : i32
    %c0_i32_1 = arith.constant 0 : i32
    return %c0_i32, %c0_i32_0 : i32, i32
  }
  func.func @transform_11(%arg0: i32) -> (i32, i32) {
    %c0_i32 = arith.constant 0 : i32
    %c0_i32_0 = arith.constant 0 : i32
    %c0_i32_1 = arith.constant 0 : i32
    return %c0_i32, %c0_i32_0 : i32, i32
  }
  func.func @transform_12(%arg0: i32) -> (i32, i32) {
    %c0_i32 = arith.constant 0 : i32
    %c0_i32_0 = arith.constant 0 : i32
    %c0_i32_1 = arith.constant 0 : i32
    return %c0_i32, %c0_i32_0 : i32, i32
  }
  func.func @transform_13(%arg0: i32) -> (i32, i32) {
    %c0_i32 = arith.constant 0 : i32
    %c0_i32_0 = arith.constant 0 : i32
    return %c0_i32, %arg0 : i32, i32
  }
  func.func @transform_14(%arg0: i32) -> (i32, i32) {
    %c0_i32 = arith.constant 0 : i32
    %c0_i32_0 = arith.constant 0 : i32
    return %c0_i32, %arg0 : i32, i32
  }
}

</mosaic_0001>

<bundles_post_ra>
// kernel: actor_forward.1
= control target key start
LH: loop header
LB: loop body
LE: loop exit
PB: predicated region body
PF: predicated region fallthrough
CT: control target
= control target key end

     0   :  { %v579_v3 = vmov 0   ;;  %vm104_vm0 = vcmask 130048   ;;  %vm62_vm1 = vcmask 261120   ;;  %s794_s0 = inlined_call_operand.vmem [shape: f32[16,16], index: 0, kind: input, shape index: {}]   ;;  %s795_s1 = inlined_call_operand.vmem [shape: f32[32,16], index: 1, kind: input, shape index: {}]   ;;  %s796_s2 = inlined_call_operand.vmem [shape: f32[32,16], index: 2, kind: input, shape index: {}]   ;;  %s797_s3 = inlined_call_operand.vmem [shape: f32[32,32], index: 3, kind: input, shape index: {}]   ;;  %s798_s4 = inlined_call_operand.vmem [shape: f32[32,1], index: 4, kind: input, shape index: {}]   ;;  %s799_s5 = inlined_call_operand.vmem [shape: f32[32,32], index: 5, kind: input, shape index: {}]   ;;  %s800_s6 = inlined_call_operand.vmem [shape: f32[32,1], index: 6, kind: input, shape index: {}]   ;;  %s801_s7 = inlined_call_operand.vmem [shape: f32[32,32], index: 7, kind: input, shape index: {}]   ;;  %s802_s8 = inlined_call_operand.vmem [shape: f32[32,1], index: 8, kind: input, shape index: {}]   ;;  %s803_s9 = inlined_call_operand.vmem [shape: f32[4,32], index: 9, kind: input, shape index: {}]   ;;  %s804_s10 = inlined_call_operand.vmem [shape: f32[4,1], index: 10, kind: input, shape index: {}]   ;;  %s805_s11 = inlined_call_operand.vmem [shape: f32[4,32], index: 11, kind: input, shape index: {}]   ;;  %s806_s12 = inlined_call_operand.vmem [shape: f32[4,1], index: 12, kind: input, shape index: {}]   ;;  %s807_s13 = inlined_call_operand.vmem [shape: f32[4,16], index: 13, kind: input, shape index: {}]   ;;  %s808_s14 = inlined_call_operand.hbm [shape: f32[4,16], index: 14, kind: output, shape index: {}]  }
   0x1   :  { %v61_v0 = vld [vmem:[%s795_s1 + $0x18] sm:$0xff]  ;;  %v60_v1 = vld [vmem:[%s795_s1 + $0x10] sm:$0xff]  ;;  %v53_v2 = vld [vmem:[%s794_s0 + $0x8] sm:$0xff]  ;;  %518 = vset.pattern.permute.xlu0 %v579_v3  ;;  %519 = vset.pattern.permute.xlu1 %v579_v3 }
   0x2   :  { %87 = vmatpush.msra.mxu0 %v61_v0  ;;  %v149_v4 = vld [vmem:[%s798_s4 + $0x18] sm:$0xff]  ;;  %v59_v5 = vld [vmem:[%s795_s1 + $0x8] sm:$0xff]  ;;  %131 = vmatpush.msra.mxu1 %v53_v2  ;;  %v52_v6 = vld [vmem:[%s794_s0] sm:$0xff] }
   0x3   :  { %167 = vperm.xlu0 %518, %v149_v4   ;;  %v48_v7 = vld [vmem:[%s796_s2] sm:$0xff]  ;;  %v147_v8 = vld [vmem:[%s798_s4 + $0x8] sm:$0xff]  ;;  %520 = vset.pattern.permute.xlu2 %v579_v3  ;;  %v148_v11 = vld [vmem:[%s798_s4 + $0x10] sm:$0xff] }
   0x4   :  { %88 = vmatpush.msra.mxu0 %v60_v1  ;;  %v58_v9 = vld [vmem:[%s795_s1] sm:$0xff]  ;;  %132 = vmatpush.msra.mxu1 %v52_v6 }
   0x5   :  { %157 = vperm.xlu1 %519, %v147_v8   ;;  %v54_v10 = vld [vmem:[%s797_s3] sm:$0xff]  ;;  %490 = vmatmul.msk.f32.vlgmr.msra.gmra.mxu1 %vm104_vm0, %v48_v7 }
   0x6   :  { %89 = vmatpush.msra.mxu0 %v59_v5 }
   0x8   :  { %90 = vmatpush.msra.mxu0 %v58_v9 }
   0x9   :  { %486 = vmatmul.msk.f32.vlgmr.msra.gmra.mxu0 %vm62_vm1, %v54_v10 }
   0xa   :  { %19 = vsyncpa [#allocation3], 0  ;;  %v146_v12 = vld [vmem:[%s798_s4] sm:$0xff]  ;;  %v49_v13 = vld [vmem:[%s796_s2 + $0x8] sm:$0xff]  ;;  %s477_s25 = sshll.u32 %s808_s14, 4  ;;  %vm468_vm15 = vcmask 125952   ;;  %s478_s25 = int_to_ptr.hbm [resolvable:$true] %s477_s25 }
   0xb   :  { %162 = vperm.xlu0 %518, %v148_v11   ;;  %v55_v14 = vld [vmem:[%s797_s3 + $0x8] sm:$0xff]  ;;  %v202_v16 = vld [vmem:[%s800_s6] sm:$0xff]  ;;  %v50_v17 = vld [vmem:[%s796_s2 + $0x10] sm:$0xff] }
   0xc   :  { %v203_v15 = vld [vmem:[%s800_s6 + $0x8] sm:$0xff]  ;;  %v56_v18 = vld [vmem:[%s797_s3 + $0x10] sm:$0xff]  ;;  %v51_v21 = vld [vmem:[%s796_s2 + $0x18] sm:$0xff] }
   0xd   :  { %152 = vperm.xlu1 %519, %v146_v12   ;;  %491 = vmatmul.msk.f32.gmra.mxu1 %vm104_vm0, %v49_v13  ;;  %v297_v19 = vld [vmem:[%s802_s8 + $0x10] sm:$0xff]  ;;  %v296_v20 = vld [vmem:[%s802_s8 + $0x8] sm:$0xff]  ;;  %v57_v22 = vld [vmem:[%s797_s3 + $0x18] sm:$0xff]  ;;  %s580_s3 = smov [#allocation2]  }
   0xe   :  { %v415_v23 = vld [vmem:[%s806_s12] sm:$0xf]  ;;  %v205_v61 = vld [vmem:[%s800_s6 + $0x18] sm:$0xff]  ;;  %v204_v3 = vld [vmem:[%s800_s6 + $0x10] sm:$0xff] }
   0xf   :  { %v385_v24 = vld [vmem:[%s804_s10] sm:$0xf]  ;;  %223 = vperm.xlu2 %520, %v205_v61   ;;  %v199_v4 = vld [vmem:[%s799_s5 + $0x8] sm:$0xff]  ;;  %v298_v5 = vld [vmem:[%s802_s8 + $0x18] sm:$0xff]  ;;  %s475_s10 = sshll.u32 %s580_s3, 4  ;;  %s476_s10 = int_to_ptr.vmem [resolvable:$true] %s475_s10 }
  0x10   :  { %v198_v1 = vld [vmem:[%s799_s5] sm:$0xff]  ;;  %v200_v6 = vld [vmem:[%s799_s5 + $0x10] sm:$0xff]  ;;  %v201_v8 = vld [vmem:[%s799_s5 + $0x18] sm:$0xff] }
  0x11   :  { %487 = vmatmul.msk.f32.gmra.mxu0 %vm62_vm1, %v55_v14  ;;  %v295_v7 = vld [vmem:[%s802_s8] sm:$0xff] }
  0x13   :  { %213 = vperm.xlu0 %518, %v203_v15  }
  0x15   :  { %208 = vperm.xlu1 %519, %v202_v16   ;;  %492 = vmatmul.msk.f32.gmra.mxu1 %vm104_vm0, %v50_v17 }
  0x17   :  { %218 = vperm.xlu2 %520, %v204_v3  }
  0x19   :  { %488 = vmatmul.msk.f32.gmra.mxu0 %vm62_vm1, %v56_v18 }
  0x1b   :  { %311 = vperm.xlu0 %518, %v297_v19  }
  0x1d   :  { %306 = vperm.xlu1 %519, %v296_v20   ;;  %493 = vmatmul.msk.f32.gmra.mxu1 %vm104_vm0, %v51_v21 }
  0x1f   :  { %316 = vperm.xlu2 %520, %v298_v5  }
  0x21   :  { %489 = vmatmul.msk.f32.gmra.mxu0 %vm62_vm1, %v57_v22 }
  0x23   :  { %418 = vperm.xlu0 %518, %v415_v23  }
  0x25   :  { %388 = vperm.xlu1 %519, %v385_v24  }
  0x27   :  { %301 = vperm.xlu2 %520, %v295_v7  }
  0x69   :  { %v224_v10 = vpop.permute.xlu2 %223 }
  0x71   :  { %v219_v12 = vpop.permute.xlu2 %218 }
  0x75   :  { %v168_v28 = vpop.permute.xlu0 %167 }
  0x77   :  { %v158_v30 = vpop.permute.xlu1 %157 }
  0x7d   :  { %v163_v35 = vpop.permute.xlu0 %162 }
  0x7f   :  { %v153_v39 = vpop.permute.xlu1 %152 }
  0x82   :  { %v134_v25 = vpop.f32.mrf.mxu1 }
  0x85   :  { %v214_v14 = vpop.permute.xlu0 %213 }
  0x86   :  { %v92_v26 = vpop.f32.mrf.mxu0 }
  0x87   :  { %v135_v36 = vadd.f32 %v134_v25, %v92_v26  ;;  %v209_v17 = vpop.permute.xlu1 %208 }
  0x89   :  { %v170_v41 = vadd.f32 %v153_v39, %v135_v36 }
  0x8a   :  { %v137_v27 = vpop.f32.mrf.mxu1 }
  0x8b   :  { %v178_v46 = vmin.f32 %v170_v41, 0.0  ;;  %vm174_vm5 = vcmp.gt.f32.partialorder %v170_v41, 0.0 }
  0x8d   :  { %v182_v52 = vmul.f32 1.442695, %v178_v46 }
  0x8e   :  { %v95_v29 = vpop.f32.mrf.mxu0 }
  0x8f   :  { %v138_v32 = vadd.f32 %v137_v27, %v95_v29 }
  0x91   :  { %v171_v38 = vadd.f32 %v158_v30, %v138_v32 }
  0x92   :  { %v140_v31 = vpop.f32.mrf.mxu1 }
  0x93   :  { %v179_v43 = vmin.f32 %v171_v38, 0.0  ;;  %vm175_vm4 = vcmp.gt.f32.partialorder %v171_v38, 0.0 }
  0x95   :  { %v184_v49 = vmul.f32 1.442695, %v179_v43  ;;  %v293_v43 = vld [vmem:[%s801_s7 + $0x10] sm:$0xff] }
  0x96   :  { %v98_v33 = vpop.f32.mrf.mxu0 }
  0x97   :  { %v141_v34 = vadd.f32 %v140_v31, %v98_v33 }
  0x99   :  { %v172_v37 = vadd.f32 %v163_v35, %v141_v34 }
  0x9a   :  { %v143_v40 = vpop.f32.mrf.mxu1 }
  0x9b   :  { %v180_v42 = vmin.f32 %v172_v37, 0.0  ;;  %vm176_vm3 = vcmp.gt.f32.partialorder %v172_v37, 0.0 }
  0x9d   :  { %v186_v48 = vmul.f32 1.442695, %v180_v42  ;;  %v292_v42 = vld [vmem:[%s801_s7 + $0x8] sm:$0xff] }
  0x9e   :  { %v101_v44 = vpop.f32.mrf.mxu0 }
  0x9f   :  { %v144_v45 = vadd.f32 %v143_v40, %v101_v44  ;;  %521 = vpow2.f32 %v186_v48  ;;  %v291_v40 = vld [vmem:[%s801_s7] sm:$0xff]  ;;  %v294_v44 = vld [vmem:[%s801_s7 + $0x18] sm:$0xff]  ;;  %v312_v48 = vpop.permute.xlu0 %311 }
  0xa0   :  { %523 = vpow2.f32 %v184_v49 }
  0xa1   :  { %v173_v47 = vadd.f32 %v168_v28, %v144_v45 }
  0xa3   :  { %v181_v50 = vmin.f32 %v173_v47, 0.0  ;;  %vm177_vm2 = vcmp.gt.f32.partialorder %v173_v47, 0.0 }
  0xa5   :  { %v188_v51 = vmul.f32 1.442695, %v181_v50  ;;  %v522_v53 = vpop.eup %521  ;;  %v307_v50 = vpop.permute.xlu1 %306 }
  0xa6   :  { %v524_v54 = vpop.eup %523  ;;  %v496_v57 = vadd.f32 -1.0, %v522_v53 }
  0xa7   :  { %525 = vpow2.f32 %v188_v51  ;;  %v495_v60 = vadd.f32 -1.0, %v524_v54 }
  0xa8   :  { %527 = vpow2.f32 %v182_v52  ;;  %v196_v62 = vsel %vm176_vm3, %v172_v37, %v496_v57 }
  0xa9   :  { %v195_v0 = vsel %vm175_vm4, %v171_v38, %v495_v60 }
  0xad   :  { %v526_v55 = vpop.eup %525 }
  0xae   :  { %v497_v56 = vadd.f32 -1.0, %v526_v55  ;;  %v528_v58 = vpop.eup %527 }
  0xaf   :  { %v494_v63 = vadd.f32 -1.0, %v528_v58 }
  0xb0   :  { %v197_v59 = vsel %vm177_vm2, %v173_v47, %v497_v56  ;;  %v317_v47 = vpop.permute.xlu2 %316 }
  0xb1   :  { %250 = vmatpush.msra.mxu2 %v197_v59  ;;  %v194_v2 = vsel %vm174_vm5, %v170_v41, %v494_v63 }
  0xb3   :  { %251 = vmatpush.msra.mxu2 %v196_v62 }
  0xb5   :  { %252 = vmatpush.msra.mxu2 %v195_v0 }
  0xb7   :  { %253 = vmatpush.msra.mxu2 %v194_v2 }
  0xb8   :  { %498 = vmatmul.msk.f32.vlgmr.msra.gmra.mxu2 %vm62_vm1, %v198_v1  ;;  %v302_v53 = vpop.permute.xlu2 %301 }
  0xc0   :  { %499 = vmatmul.msk.f32.gmra.mxu2 %vm62_vm1, %v199_v4 }
  0xc8   :  { %500 = vmatmul.msk.f32.gmra.mxu2 %vm62_vm1, %v200_v6 }
  0xd0   :  { %501 = vmatmul.msk.f32.gmra.mxu2 %vm62_vm1, %v201_v8 }
 0x13b   :  { %v255_v9 = vpop.f32.mrf.mxu2 }
 0x13c   :  { %v256_v18 = vadd.f32 %v255_v9, %v209_v17 }
 0x13e   :  { %v271_v22 = vmin.f32 %v256_v18, 0.0  ;;  %vm267_vm9 = vcmp.gt.f32.partialorder %v256_v18, 0.0 }
 0x140   :  { %v275_v27 = vmul.f32 1.442695, %v271_v22 }
 0x143   :  { %v258_v11 = vpop.f32.mrf.mxu2 }
 0x144   :  { %v259_v16 = vadd.f32 %v258_v11, %v214_v14 }
 0x146   :  { %v272_v20 = vmin.f32 %v259_v16, 0.0  ;;  %vm268_vm8 = vcmp.gt.f32.partialorder %v259_v16, 0.0 }
 0x148   :  { %v277_v25 = vmul.f32 1.442695, %v272_v20 }
 0x14b   :  { %v261_v13 = vpop.f32.mrf.mxu2 }
 0x14c   :  { %v262_v15 = vadd.f32 %v261_v13, %v219_v12  ;;  %v384_v12 = vld [vmem:[%s803_s9] sm:$0xf] }
 0x14d   :  { %v414_v13 = vld [vmem:[%s805_s11] sm:$0xf] }
 0x14e   :  { %v273_v19 = vmin.f32 %v262_v15, 0.0  ;;  %vm269_vm7 = vcmp.gt.f32.partialorder %v262_v15, 0.0 }
 0x150   :  { %v279_v23 = vmul.f32 1.442695, %v273_v19 }
 0x152   :  { %529 = vpow2.f32 %v279_v23  ;;  %v389_v23 = vpop.permute.xlu1 %388 }
 0x153   :  { %v264_v21 = vpop.f32.mrf.mxu2  ;;  %531 = vpow2.f32 %v277_v25 }
 0x154   :  { %v265_v24 = vadd.f32 %v264_v21, %v224_v10 }
 0x156   :  { %v274_v26 = vmin.f32 %v265_v24, 0.0  ;;  %vm270_vm6 = vcmp.gt.f32.partialorder %v265_v24, 0.0 }
 0x158   :  { %v281_v28 = vmul.f32 1.442695, %v274_v26  ;;  %v530_v29 = vpop.eup %529 }
 0x159   :  { %v532_v30 = vpop.eup %531  ;;  %v504_v33 = vadd.f32 -1.0, %v530_v29 }
 0x15a   :  { %533 = vpow2.f32 %v281_v28  ;;  %v503_v36 = vadd.f32 -1.0, %v532_v30 }
 0x15b   :  { %535 = vpow2.f32 %v275_v27  ;;  %v289_v37 = vsel %vm269_vm7, %v262_v15, %v504_v33  ;;  %v419_v15 = vpop.permute.xlu0 %418 }
 0x15c   :  { %v288_v39 = vsel %vm268_vm8, %v259_v16, %v503_v36 }
 0x160   :  { %v534_v31 = vpop.eup %533 }
 0x161   :  { %v505_v32 = vadd.f32 -1.0, %v534_v31  ;;  %v536_v34 = vpop.eup %535 }
 0x162   :  { %v502_v38 = vadd.f32 -1.0, %v536_v34 }
 0x163   :  { %v290_v35 = vsel %vm270_vm6, %v265_v24, %v505_v32 }
 0x164   :  { %343 = vmatpush.msra.mxu3 %v290_v35  ;;  %v287_v41 = vsel %vm267_vm9, %v256_v18, %v502_v38  ;;  %v464_v38 = vld [vmem:[%s807_s13] sm:$0xf] }
 0x166   :  { %344 = vmatpush.msra.mxu3 %v289_v37 }
 0x168   :  { %345 = vmatpush.msra.mxu3 %v288_v39 }
 0x16a   :  { %346 = vmatpush.msra.mxu3 %v287_v41 }
 0x16b   :  { %506 = vmatmul.msk.f32.vlgmr.msra.gmra.mxu3 %vm62_vm1, %v291_v40 }
 0x173   :  { %507 = vmatmul.msk.f32.gmra.mxu3 %vm62_vm1, %v292_v42 }
 0x17b   :  { %508 = vmatmul.msk.f32.gmra.mxu3 %vm62_vm1, %v293_v43 }
 0x183   :  { %509 = vmatmul.msk.f32.gmra.mxu3 %vm62_vm1, %v294_v44 }
 0x1ee   :  { %v348_v45 = vpop.f32.mrf.mxu3 }
 0x1ef   :  { %v349_v54 = vadd.f32 %v348_v45, %v302_v53 }
 0x1f1   :  { %v364_v58 = vmin.f32 %v349_v54, 0.0  ;;  %vm360_vm13 = vcmp.gt.f32.partialorder %v349_v54, 0.0 }
 0x1f3   :  { %v368_v63 = vmul.f32 1.442695, %v364_v58 }
 0x1f6   :  { %v351_v46 = vpop.f32.mrf.mxu3 }
 0x1f7   :  { %v352_v52 = vadd.f32 %v351_v46, %v307_v50 }
 0x1f9   :  { %v365_v56 = vmin.f32 %v352_v52, 0.0  ;;  %vm361_vm12 = vcmp.gt.f32.partialorder %v352_v52, 0.0 }
 0x1fb   :  { %v370_v61 = vmul.f32 1.442695, %v365_v56 }
 0x1fe   :  { %v354_v49 = vpop.f32.mrf.mxu3 }
 0x1ff   :  { %v355_v51 = vadd.f32 %v354_v49, %v312_v48 }
 0x201   :  { %v366_v55 = vmin.f32 %v355_v51, 0.0  ;;  %vm362_vm11 = vcmp.gt.f32.partialorder %v355_v51, 0.0 }
 0x203   :  { %v372_v59 = vmul.f32 1.442695, %v366_v55 }
 0x205   :  { %537 = vpow2.f32 %v372_v59 }
 0x206   :  { %v357_v57 = vpop.f32.mrf.mxu3  ;;  %539 = vpow2.f32 %v370_v61 }
 0x207   :  { %v358_v60 = vadd.f32 %v357_v57, %v317_v47 }
 0x209   :  { %v367_v62 = vmin.f32 %v358_v60, 0.0  ;;  %vm363_vm10 = vcmp.gt.f32.partialorder %v358_v60, 0.0 }
 0x20b   :  { %v374_v0 = vmul.f32 1.442695, %v367_v62  ;;  %v538_v1 = vpop.eup %537 }
 0x20c   :  { %v540_v2 = vpop.eup %539  ;;  %v512_v5 = vadd.f32 -1.0, %v538_v1 }
 0x20d   :  { %541 = vpow2.f32 %v374_v0  ;;  %v511_v8 = vadd.f32 -1.0, %v540_v2 }
 0x20e   :  { %543 = vpow2.f32 %v368_v63  ;;  %v382_v9 = vsel %vm362_vm11, %v355_v51, %v512_v5 }
 0x20f   :  { %v381_v11 = vsel %vm361_vm12, %v352_v52, %v511_v8 }
 0x213   :  { %v542_v3 = vpop.eup %541 }
 0x214   :  { %v513_v4 = vadd.f32 -1.0, %v542_v3  ;;  %v544_v6 = vpop.eup %543 }
 0x215   :  { %v510_v10 = vadd.f32 -1.0, %v544_v6 }
 0x216   :  { %v383_v7 = vsel %vm363_vm10, %v358_v60, %v513_v4 }
 0x217   :  { %406 = vmatpush.msrb.mxu1 %v383_v7  ;;  %436 = vmatpush.msrb.mxu0 %v383_v7  ;;  %v380_v14 = vsel %vm360_vm13, %v349_v54, %v510_v10 }
 0x219   :  { %407 = vmatpush.msrb.mxu1 %v382_v9  ;;  %437 = vmatpush.msrb.mxu0 %v382_v9 }
 0x21b   :  { %408 = vmatpush.msrb.mxu1 %v381_v11  ;;  %438 = vmatpush.msrb.mxu0 %v381_v11 }
 0x21d   :  { %409 = vmatpush.msrb.mxu1 %v380_v14  ;;  %439 = vmatpush.msrb.mxu0 %v380_v14 }
 0x21e   :  { %514 = vmatmul.msk.f32.vlgmr.msrb.gmra.mxu1 %vm62_vm1, %v384_v12  ;;  %515 = vmatmul.msk.f32.vlgmr.msrb.gmra.mxu0 %vm62_vm1, %v414_v13 }
 0x29b   :  { %v441_v16 = vpop.f32.mrf.mxu0  ;;  %v411_v22 = vpop.f32.mrf.mxu1 }
 0x29c   :  { %v442_v17 = vadd.f32 %v441_v16, %v419_v15  ;;  %v412_v25 = vadd.f32 %v411_v22, %v389_v23 }
 0x29e   :  { %v447_v18 = vadd.f32 5.0, %v442_v17  ;;  %v444_v28 = vmul.f32 0.2, %v412_v25 }
 0x2a0   :  { %v449_v19 = vand.u32 2147483647, %v447_v18  ;;  %v448_v34 = vmax.f32 %v447_v18, 0.0 }
 0x2a2   :  { %v450_v20 = vsub.f32 0.0, %v449_v19 }
 0x2a4   :  { %v451_v21 = vmul.f32 1.442695, %v450_v20 }
 0x2a6   :  { %545 = vpow2.f32 %v451_v21 }
 0x2ac   :  { %v546_v24 = vpop.eup %545 }
 0x2ad   :  { %v453_v26 = vadd.f32 1.0, %v546_v24  ;;  %v456_v27 = vmul.f32 -0.5, %v546_v24  ;;  %v459_v30 = vand.u32 2147483647, %v546_v24 }
 0x2af   :  { %547 = vlog2.f32 %v453_v26  ;;  %v457_v29 = vadd.f32 1.0, %v456_v27  ;;  %vm460_vm14 = vcmp.lt.f32.partialorder %v459_v30, 0.0004427343 }
 0x2b0   :  { %549 = vtanh.f32 %v444_v28 }
 0x2b1   :  { %v458_v33 = vmul.f32 %v546_v24, %v457_v29 }
 0x2b5   :  { %v548_v31 = vpop.eup %547 }
 0x2b6   :  { %v455_v32 = vmul.f32 0.6931472, %v548_v31  ;;  %v550_v37 = vpop.eup %549 }
 0x2b7   :  { %v446_v40 = vmul.f32 5.0, %v550_v37 }
 0x2b8   :  { %v461_v35 = vsel %vm460_vm14, %v458_v33, %v455_v32 }
 0x2b9   :  { %v462_v36 = vadd.f32 %v461_v35, %v448_v34 }
 0x2bb   :  { %v463_v39 = vadd.f32 0.0001, %v462_v36 }
 0x2bd   :  { %v465_v41 = vmul.f32 %v464_v38, %v463_v39 }
 0x2bf   :  { %v466_v42 = vadd.f32 %v465_v41, %v446_v40 }
 0x2c1   :  { %551 = vtanh.f32 %v466_v42 }
 0x2c7   :  { %v552_v43 = vpop.eup %551 }
 0x2c8   :  { %469 = vst.msk [vmem:[#allocation2] sm:$0xf] %vm468_vm15, %v552_v43 }
 0x2c9   :  { %480 = dma.vmem_to_hbm [thread:$0]  %s476_s10, 64, %s478_s25, [#allocation3]  }
 0x2ca   :  { %577 = dma.done.wait [#allocation3], 64  }
 0x2cb   :  { %578 = vsyncadd [#allocation3], 4294967232 }
 0x2cc   :  { %485 = vsyncpa [#allocation3], 1 }

</bundles_post_ra>
